<compile_context>
chip_gen: v7x
topology: tpu7x:2x2x1
jax: 0.10.0
libtpu: 0.0.40
codegen_flags: <defaults>
</compile_context>

<pallas_src>
import numpy as np
import jax
import jax.numpy as jnp
from jax.experimental import pallas as pl
from jax.experimental.pallas import tpu as pltpu

ETA = 1e-5     # pvae Constants.eta
LANE = 128
SUBLANE = 8


def _round_up(x: int, m: int) -> int:
    return ((x + m - 1) // m) * m


# ----------------------------------------------------------------------------- kernel
def _make_enc_kernel(num_enc_layers: int, coord_dim: int):
    """Kernel closed over the (static) layer count and the mu/scale column split."""

    def kernel(x_ref, *refs):
        out_ref = refs[-1]
        wb = refs[:-1]  # w0, b0, ..., w_{L-1}, b_{L-1}, w_head, b_head

        h = x_ref[...].astype(jnp.float32)

        # --- enc: (Linear + ReLU) * num_enc_layers ---
        for li in range(num_enc_layers):
            w = wb[2 * li][...]
            b = wb[2 * li + 1][...].astype(jnp.float32)
            h = jnp.dot(h.astype(w.dtype), w, preferred_element_type=jnp.float32) + b
            h = jnp.maximum(h, 0.0)  # non_lin = ReLU (zero-padding exact since ReLU(0)=0)

        # --- fused head: [fc21 | fc22] in one MXU pass ---
        w_h = wb[2 * num_enc_layers][...]
        b_h = wb[2 * num_enc_layers + 1][...].astype(jnp.float32)
        pre = jnp.dot(h.astype(w_h.dtype), w_h, preferred_element_type=jnp.float32) + b_h

        # columns [0, C): mu (identity); columns [C, ...): softplus(pre) + eta
        # numerically stable softplus: max(x,0) + log1p(exp(-|x|))   (exp/log go to EUP)
        sp = jnp.maximum(pre, 0.0) + jnp.log1p(jnp.exp(-jnp.abs(pre))) + ETA
        col = jax.lax.broadcasted_iota(jnp.int32, pre.shape, 1)
        out = jnp.where(col < coord_dim, pre, sp)

        out_ref[...] = out.astype(out_ref.dtype)

    return kernel


# ------------------------------------------------------------------- one-time param prep
def prepare_enc_linear_params(enc_params, fc21_params, fc22_params, data_size,
                              param_dtype=None):
    """Pad / cast / fuse parameters ONCE (hoisted out of the per-call forward).

    enc_params : list of (W, b), W: (in, out), b: (out,)
    fc21/fc22  : (W, b) with W: (hidden, coord_dim) / (hidden, coord_dim or 1)
    param_dtype: optional weight storage dtype (e.g. jnp.bfloat16); biases stay f32.

    Returns (flat_params, meta).
    """
    data_size = tuple(data_size)
    D = int(np.prod(data_size))
    C = int(fc21_params[0].shape[1])
    S = int(fc22_params[0].shape[1])
    Dp = _round_up(D, LANE)
    CSp = _round_up(C + S, LANE)      # joint padding of the fused head output

    def pad2(a, rows, cols):
        a = jnp.asarray(a)
        if a.shape == (rows, cols):
            return a
        return jnp.pad(a, ((0, rows - a.shape[0]), (0, cols - a.shape[1])))

    flat = []
    in_rows = Dp
    hp_dims = []
    for (w, b) in enc_params:
        out_p = _round_up(int(w.shape[1]), LANE)
        wp = pad2(w, in_rows, out_p)
        if param_dtype is not None:
            wp = wp.astype(param_dtype)
        bp = pad2(jnp.asarray(b).reshape(1, -1), 1, out_p).astype(jnp.float32)
        flat += [wp, bp]
        hp_dims.append(out_p)
        in_rows = out_p
    Hp = in_rows

    # fused head weight/bias: [fc21 | fc22]
    w_head = jnp.concatenate([jnp.asarray(fc21_params[0]), jnp.asarray(fc22_params[0])], axis=1)
    b_head = jnp.concatenate([jnp.asarray(fc21_params[1]), jnp.asarray(fc22_params[1])], axis=0)
    w_head = pad2(w_head, Hp, CSp)
    if param_dtype is not None:
        w_head = w_head.astype(param_dtype)
    b_head = pad2(b_head.reshape(1, -1), 1, CSp).astype(jnp.float32)
    flat += [w_head, b_head]

    meta = dict(D=D, C=C, S=S, Dp=Dp, Hp=Hp, CSp=CSp,
                hp_dims=tuple(hp_dims), num_enc_layers=len(enc_params))
    return flat, meta


# --------------------------------------------------------------------------- tile choice
def _choose_batch_tile(B, Dp, CSp, itemsize):
    B = max(int(B), 1)
    if B <= SUBLANE:
        tb = _round_up(B, SUBLANE)
        return tb, tb
    # Large tiles amortize the ~0.35us per-grid-step overhead; cap at 512 and at half the
    # batch so the grid has >= 2 steps ("parallel" axis can split across v7x's 2 TCs).
    tb = min(512, _round_up(B, SUBLANE))
    half = _round_up(pl.cdiv(B, 2), SUBLANE)
    tb = min(tb, half)
    # Keep double-buffered x + out activation blocks within a conservative VMEM budget
    # (safe on v7x's 64 MiB per-TC VMEM as well as v5e/v6e's 128 MiB).
    budget = 24 << 20
    per_row = 2 * (Dp + CSp) * itemsize
    max_tb = max(SUBLANE, (budget // per_row) // SUBLANE * SUBLANE)
    tb = max(SUBLANE, min(tb, max_tb))
    return tb, _round_up(B, tb)


# -------------------------------------------------------------------------------- forward
def enc_linear_forward(x, prepared, data_size, manifold=None, *,
                       single_buffer_weights=False):
    """EncLinear forward using pre-padded/fused params from prepare_enc_linear_params().

    Returns (mu, scale, manifold), matching the PyTorch module (manifold is a pass-through).
    """
    flat, meta = prepared
    data_size = tuple(data_size)
    lead = x.shape[: x.ndim - len(data_size)]
    B = int(np.prod(lead)) if lead else 1
    D, C, S = meta["D"], meta["C"], meta["S"]
    Dp, Hp, CSp = meta["Dp"], meta["Hp"], meta["CSp"]

    itemsize = jnp.dtype(x.dtype).itemsize
    TB, Bp = _choose_batch_tile(B, Dp, CSp, itemsize)

    x2 = x.reshape(B, D)
    # Only pad when strictly needed (skip the extra HBM pass for aligned shapes).
    x_p = x2 if (Bp == B and Dp == D) else jnp.pad(x2, ((0, Bp - B), (0, Dp - D)))

    grid = (Bp // TB,)
    x_spec = pl.BlockSpec((TB, Dp), lambda i: (i, 0))
    if single_buffer_weights:
        # v7x lever: constant-index weights fetched once -> single buffer halves weight VMEM.
        w_specs = [pl.BlockSpec(tuple(a.shape), lambda i: (0, 0),
                                pipeline_mode=pl.Buffered(1)) for a in flat]
    else:
        w_specs = [pl.BlockSpec(tuple(a.shape), lambda i: (0, 0)) for a in flat]
    out_spec = pl.BlockSpec((TB, CSp), lambda i: (i, 0))
    out_shape = jax.ShapeDtypeStruct((Bp, CSp), x.dtype)

    # --- explicit VMEM budget (resident weights + double-buffered I/O blocks + headroom) ---
    w_bytes = sum(int(a.size * a.dtype.itemsize) for a in flat)
    io_block_bytes = (TB * Dp + TB * CSp) * itemsize
    act_bytes = TB * Hp * 4          # live f32 intermediate inside the body
    vmem_needed = w_bytes * (1 if single_buffer_weights else 2) + 2 * io_block_bytes + 2 * act_bytes
    vmem_limit = int(min(max(int(vmem_needed * 1.25), 16 << 20), 100 << 20))

    # --- advisory cost estimate ---
    flops = 0
    prev = Dp
    for hp in meta["hp_dims"]:
        flops += 2 * Bp * prev * hp
        prev = hp
    flops += 2 * Bp * Hp * CSp
    bytes_accessed = int(x_p.size * x_p.dtype.itemsize) + w_bytes + int(Bp * CSp * itemsize)
    cost = pl.CostEstimate(flops=int(flops), transcendentals=int(2 * Bp * CSp),
                           bytes_accessed=int(bytes_accessed))

    kernel = _make_enc_kernel(meta["num_enc_layers"], C)
    out_p = pl.pallas_call(
        kernel,
        grid=grid,
        in_specs=[x_spec] + w_specs,
        out_specs=out_spec,
        out_shape=out_shape,
        compiler_params=pltpu.CompilerParams(
            dimension_semantics=("parallel",),
            vmem_limit_bytes=vmem_limit),
        cost_estimate=cost,
    )(x_p, *flat)

    mu = out_p[:B, :C].reshape(lead + (C,))
    scale = out_p[:B, C:C + S].reshape(lead + (S,))
    # TODO(synk): `manifold` is a Python object in the PyTorch module; it is passed through here.
    return mu, scale, manifold


# ----------------------------------------------------------------------------------- demo
def _init_linear(key, fan_in, fan_out):
    # Deterministic PyTorch-style (Kaiming-uniform-ish) init.
    kw, kb = jax.random.split(key)
    bound = 1.0 / np.sqrt(fan_in)
    w = jax.random.uniform(kw, (fan_in, fan_out), jnp.float32, -bound, bound)
    b = jax.random.uniform(kb, (fan_out,), jnp.float32, -bound, bound)
    return w, b


if __name__ == "__main__":
    # Small, forward-consistent shapes.
    B = 8
    data_size = (4, 4)          # x flattened to 16 features
    hidden_dim = 32
    num_hidden_layers = 2       # total encoder Linear+ReLU layers
    coord_dim = 6               # manifold.coord_dim
    prior_iso = False
    scale_dim = coord_dim if not prior_iso else 1

    D = int(np.prod(data_size))
    key = jax.random.PRNGKey(0)
    keys = jax.random.split(key, num_hidden_layers + 3)

    x = jax.random.normal(keys[0], (B,) + data_size, jnp.float32)

    enc_params = []
    fan_in = D
    for li in range(num_hidden_layers):
        enc_params.append(_init_linear(keys[1 + li], fan_in, hidden_dim))
        fan_in = hidden_dim
    fc21 = _init_linear(keys[num_hidden_layers + 1], hidden_dim, coord_dim)
    fc22 = _init_linear(keys[num_hidden_layers + 2], hidden_dim, scale_dim)

    # Pure-JAX reference of the same math.
    e = x.reshape(B, D)
    for (w, b) in enc_params:
        e = jnp.maximum(e @ w + b, 0.0)
    mu_ref = e @ fc21[0] + fc21[1]
    scale_ref = jax.nn.softplus(e @ fc22[0] + fc22[1]) + ETA

    # --- f32 weights: exact to tight tolerance ---
    prepared_f32 = prepare_enc_linear_params(enc_params, fc21, fc22, data_size)
    mu, scale, _ = enc_linear_forward(x, prepared_f32, data_size)
    jax.block_until_ready((mu, scale))
    assert mu.shape == (B, coord_dim), mu.shape
    assert scale.shape == (B, scale_dim), scale.shape
    assert bool(jnp.all(jnp.isfinite(mu))) and bool(jnp.all(scale > 0))
    np.testing.assert_allclose(np.asarray(mu), np.asarray(mu_ref), rtol=1e-5, atol=1e-5)
    np.testing.assert_allclose(np.asarray(scale), np.asarray(scale_ref), rtol=1e-5, atol=1e-5)

    # --- bf16 weights: halved weight VMEM/DMA, f32 accumulation (loose tolerance by design) ---
    prepared_bf16 = prepare_enc_linear_params(enc_params, fc21, fc22, data_size,
                                              param_dtype=jnp.bfloat16)
    mu_b, scale_b, _ = enc_linear_forward(x, prepared_bf16, data_size)
    jax.block_until_ready((mu_b, scale_b))
    assert bool(jnp.all(jnp.isfinite(mu_b))) and bool(jnp.all(scale_b > 0))
    np.testing.assert_allclose(np.asarray(mu_b), np.asarray(mu_ref), rtol=5e-2, atol=5e-2)
    np.testing.assert_allclose(np.asarray(scale_b), np.asarray(scale_ref), rtol=5e-2, atol=5e-2)

    print("KERNEL_OK")
</pallas_src>

<mosaic_0001>
module attributes {stable_mosaic.version = 11 : i64} {
  func.func @kernel(%arg0: i32, %arg1: memref<8x128xf32, #tpu.memory_space<vmem>>, %arg2: memref<128x128xf32, #tpu.memory_space<vmem>>, %arg3: memref<1x128xf32, #tpu.memory_space<vmem>>, %arg4: memref<128x128xf32, #tpu.memory_space<vmem>>, %arg5: memref<1x128xf32, #tpu.memory_space<vmem>>, %arg6: memref<128x128xf32, #tpu.memory_space<vmem>>, %arg7: memref<1x128xf32, #tpu.memory_space<vmem>>, %arg8: memref<8x128xf32, #tpu.memory_space<vmem>>) attributes {dimension_semantics = [#tpu.dimension_semantics<parallel>], iteration_bounds = array<i64: 1>, scalar_prefetch = 0 : i64, scratch_operands = 0 : i64, tpu.core_type = #tpu.core_type<tc>, window_params = [{transform_indices = @transform_0, window_bounds = array<i64: 8, 128>}, {pipeline_mode = #tpu.pipeline_mode<synchronous>, transform_indices = @transform_1, window_bounds = array<i64: 128, 128>}, {pipeline_mode = #tpu.pipeline_mode<synchronous>, transform_indices = @transform_2, window_bounds = array<i64: 1, 128>}, {pipeline_mode = #tpu.pipeline_mode<synchronous>, transform_indices = @transform_3, window_bounds = array<i64: 128, 128>}, {pipeline_mode = #tpu.pipeline_mode<synchronous>, transform_indices = @transform_4, window_bounds = array<i64: 1, 128>}, {pipeline_mode = #tpu.pipeline_mode<synchronous>, transform_indices = @transform_5, window_bounds = array<i64: 128, 128>}, {pipeline_mode = #tpu.pipeline_mode<synchronous>, transform_indices = @transform_6, window_bounds = array<i64: 1, 128>}, {transform_indices = @transform_7, window_bounds = array<i64: 8, 128>}]} {
    %c0 = arith.constant 0 : index
    %c0_0 = arith.constant 0 : index
    %0 = vector.load %arg1[%c0, %c0_0] : memref<8x128xf32, #tpu.memory_space<vmem>>, vector<8x128xf32>
    %c0_1 = arith.constant 0 : index
    %c0_2 = arith.constant 0 : index
    %1 = vector.load %arg2[%c0_1, %c0_2] : memref<128x128xf32, #tpu.memory_space<vmem>>, vector<128x128xf32>
    %c0_3 = arith.constant 0 : index
    %c0_4 = arith.constant 0 : index
    %2 = vector.load %arg3[%c0_3, %c0_4] : memref<1x128xf32, #tpu.memory_space<vmem>>, vector<1x128xf32>
    %cst = arith.constant dense<0.000000e+00> : vector<8x128xf32>
    %3 = tpu.matmul %0, %1, %cst {dimension_numbers = #tpu.dot_dimension_numbers<[1], [0], [0], [1], [0, 0, 1, 1], [], []>} : vector<8x128xf32>, vector<128x128xf32>, vector<8x128xf32> -> vector<8x128xf32>
    %4 = vector.broadcast %2 : vector<1x128xf32> to vector<8x128xf32>
    %5 = arith.addf %3, %4 : vector<8x128xf32>
    %cst_5 = arith.constant 0.000000e+00 : f32
    %6 = vector.broadcast %cst_5 : f32 to vector<8x128xf32>
    %7 = arith.maximumf %5, %6 : vector<8x128xf32>
    %c0_6 = arith.constant 0 : index
    %c0_7 = arith.constant 0 : index
    %8 = vector.load %arg4[%c0_6, %c0_7] : memref<128x128xf32, #tpu.memory_space<vmem>>, vector<128x128xf32>
    %c0_8 = arith.constant 0 : index
    %c0_9 = arith.constant 0 : index
    %9 = vector.load %arg5[%c0_8, %c0_9] : memref<1x128xf32, #tpu.memory_space<vmem>>, vector<1x128xf32>
    %cst_10 = arith.constant dense<0.000000e+00> : vector<8x128xf32>
    %10 = tpu.matmul %7, %8, %cst_10 {dimension_numbers = #tpu.dot_dimension_numbers<[1], [0], [0], [1], [0, 0, 1, 1], [], []>} : vector<8x128xf32>, vector<128x128xf32>, vector<8x128xf32> -> vector<8x128xf32>
    %11 = vector.broadcast %9 : vector<1x128xf32> to vector<8x128xf32>
    %12 = arith.addf %10, %11 : vector<8x128xf32>
    %cst_11 = arith.constant 0.000000e+00 : f32
    %13 = vector.broadcast %cst_11 : f32 to vector<8x128xf32>
    %14 = arith.maximumf %12, %13 : vector<8x128xf32>
    %c0_12 = arith.constant 0 : index
    %c0_13 = arith.constant 0 : index
    %15 = vector.load %arg6[%c0_12, %c0_13] : memref<128x128xf32, #tpu.memory_space<vmem>>, vector<128x128xf32>
    %c0_14 = arith.constant 0 : index
    %c0_15 = arith.constant 0 : index
    %16 = vector.load %arg7[%c0_14, %c0_15] : memref<1x128xf32, #tpu.memory_space<vmem>>, vector<1x128xf32>
    %cst_16 = arith.constant dense<0.000000e+00> : vector<8x128xf32>
    %17 = tpu.matmul %14, %15, %cst_16 {dimension_numbers = #tpu.dot_dimension_numbers<[1], [0], [0], [1], [0, 0, 1, 1], [], []>} : vector<8x128xf32>, vector<128x128xf32>, vector<8x128xf32> -> vector<8x128xf32>
    %18 = vector.broadcast %16 : vector<1x128xf32> to vector<8x128xf32>
    %19 = arith.addf %17, %18 : vector<8x128xf32>
    %cst_17 = arith.constant 0.000000e+00 : f32
    %20 = vector.broadcast %cst_17 : f32 to vector<8x128xf32>
    %21 = arith.maximumf %19, %20 : vector<8x128xf32>
    %22 = math.absf %19 : vector<8x128xf32>
    %cst_18 = arith.constant 0.000000e+00 : f32
    %23 = vector.broadcast %cst_18 : f32 to vector<8x128xf32>
    %24 = arith.subf %23, %22 : vector<8x128xf32>
    %25 = math.exp %24 : vector<8x128xf32>
    %26 = math.log1p %25 : vector<8x128xf32>
    %27 = arith.addf %21, %26 : vector<8x128xf32>
    %cst_19 = arith.constant 9.99999974E-6 : f32
    %28 = vector.broadcast %cst_19 : f32 to vector<8x128xf32>
    %29 = arith.addf %27, %28 : vector<8x128xf32>
    %30 = tpu.iota {dimensions = array<i32: 1>} : vector<8x128xi32>
    %c6_i32 = arith.constant 6 : i32
    %31 = vector.broadcast %c6_i32 : i32 to vector<8x128xi32>
    %32 = arith.cmpi slt, %30, %31 : vector<8x128xi32>
    %33 = arith.select %32, %19, %29 : vector<8x128xi1>, vector<8x128xf32>
    %c0_20 = arith.constant 0 : index
    %c0_21 = arith.constant 0 : index
    %34 = vector.load %arg8[%c0_20, %c0_21] : memref<8x128xf32, #tpu.memory_space<vmem>>, vector<8x128xf32>
    tpu.vector_store %arg8[%c0_20, %c0_21], %33 {strides = array<i32>} : memref<8x128xf32, #tpu.memory_space<vmem>>, vector<8x128xf32>,
    return
  }
  func.func @transform_0(%arg0: i32) -> (i32, i32) {
    %c0_i32 = arith.constant 0 : i32
    %c0_i32_0 = arith.constant 0 : i32
    return %arg0, %c0_i32 : i32, i32
  }
  func.func @transform_1(%arg0: i32) -> (i32, i32) {
    %c0_i32 = arith.constant 0 : i32
    %c0_i32_0 = arith.constant 0 : i32
    %c0_i32_1 = arith.constant 0 : i32
    return %c0_i32, %c0_i32_0 : i32, i32
  }
  func.func @transform_2(%arg0: i32) -> (i32, i32) {
    %c0_i32 = arith.constant 0 : i32
    %c0_i32_0 = arith.constant 0 : i32
    %c0_i32_1 = arith.constant 0 : i32
    return %c0_i32, %c0_i32_0 : i32, i32
  }
  func.func @transform_3(%arg0: i32) -> (i32, i32) {
    %c0_i32 = arith.constant 0 : i32
    %c0_i32_0 = arith.constant 0 : i32
    %c0_i32_1 = arith.constant 0 : i32
    return %c0_i32, %c0_i32_0 : i32, i32
  }
  func.func @transform_4(%arg0: i32) -> (i32, i32) {
    %c0_i32 = arith.constant 0 : i32
    %c0_i32_0 = arith.constant 0 : i32
    %c0_i32_1 = arith.constant 0 : i32
    return %c0_i32, %c0_i32_0 : i32, i32
  }
  func.func @transform_5(%arg0: i32) -> (i32, i32) {
    %c0_i32 = arith.constant 0 : i32
    %c0_i32_0 = arith.constant 0 : i32
    %c0_i32_1 = arith.constant 0 : i32
    return %c0_i32, %c0_i32_0 : i32, i32
  }
  func.func @transform_6(%arg0: i32) -> (i32, i32) {
    %c0_i32 = arith.constant 0 : i32
    %c0_i32_0 = arith.constant 0 : i32
    %c0_i32_1 = arith.constant 0 : i32
    return %c0_i32, %c0_i32_0 : i32, i32
  }
  func.func @transform_7(%arg0: i32) -> (i32, i32) {
    %c0_i32 = arith.constant 0 : i32
    %c0_i32_0 = arith.constant 0 : i32
    return %arg0, %c0_i32 : i32, i32
  }
}

</mosaic_0001>

<bundles_post_ra>
// kernel: tpu_custom_call.1
= control target key start
LH: loop header
LB: loop body
LE: loop exit
PB: predicated region body
PF: predicated region fallthrough
CT: control target
= control target key end

     0   :  { %12 = vsyncpa [#allocation3], 0  ;;  %s921_s0 = inlined_call_operand.hbm [shape: f32[8,128], index: 0, kind: input, shape index: {}]   ;;  %s922_s1 = inlined_call_operand.hbm [shape: f32[128,128], index: 1, kind: input, shape index: {}]   ;;  %s923_s2 = inlined_call_operand.vmem [shape: f32[1,128], index: 2, kind: input, shape index: {}]   ;;  %s924_s3 = inlined_call_operand.hbm [shape: f32[128,128], index: 3, kind: input, shape index: {}]   ;;  %s925_s4 = inlined_call_operand.vmem [shape: f32[1,128], index: 4, kind: input, shape index: {}]   ;;  %s926_s5 = inlined_call_operand.hbm [shape: f32[128,128], index: 5, kind: input, shape index: {}]   ;;  %s927_s6 = inlined_call_operand.vmem [shape: f32[1,128], index: 6, kind: input, shape index: {}]   ;;  %s928_s7 = inlined_call_operand.hbm [shape: f32[8,128], index: 7, kind: output, shape index: {}]  }
   0x1   :  { %13 = vsyncpa [#allocation6], 0 }
   0x2   :  { %14 = vsyncpa [#allocation9], 0 }
   0x3   :  { %15 = vsyncpa [#allocation4], 0  ;;  %s763_s24 = smov [#allocation5]   ;;  %s645_s28 = scalar_lea.hbm %s922_s1, 2048 }
   0x4   :  { %s31_s25 = sshll.u32 %s763_s24, 4  ;;  %p646_p0 = scmp.ne.s32.totalorder %s922_s1, %s645_s28  ;;  %s32_s25 = int_to_ptr.vmem [resolvable:$true] %s31_s25 }
   0x5   :  { %p649_p1 = scmp.lt.u32.totalorder %s645_s28, %s922_s1 }
   0x7   :  { %p651_p2 = pnand %p649_p1, %p646_p0 }
   0x9   :  { %654 = shalt.err (!%p651_p2)
}
   0xa   :  { %s655_s10 = scalar_lea.vmem %s32_s25, 2048  ;;  %p660_p4 = scmp.lt.s32.totalorder %s32_s25, %s32_s25 }
   0xb   :  { %p656_p3 = scmp.ne.s32.totalorder %s32_s25, %s655_s10  ;;  %p661_p5 = scmp.lt.s32.totalorder %s655_s10, %s655_s10 }
   0xd   :  { %p662_p6 = por %p661_p5, %p660_p4 }
   0xf   :  { %p663_p7 = pnand %p662_p6, %p656_p3 }
  0x11   :  { %666 = shalt.err (!%p663_p7)
}
  0x12   :  { %s764_s11 = smov 128   ;;  %s765_s12 = smov 8  }
  0x13   :  { %37 = dma.hbm_to_vmem [thread:$0]  %s922_s1, 2048, %s32_s25, [#allocation6], %s764_s11, %s764_s11, %s765_s12  }
  0x14   :  { %s766_s15 = smov [#allocation2]   ;;  %s767_s17 = smov [#allocation7]  }
  0x15   :  { %s22_s16 = sshll.u32 %s766_s15, 4  ;;  %s45_s18 = sshll.u32 %s767_s17, 4  ;;  %s23_s16 = int_to_ptr.vmem [resolvable:$true] %s22_s16  ;;  %s46_s18 = int_to_ptr.vmem [resolvable:$true] %s45_s18 }
  0x16   :  { %s667_s21 = scalar_lea.hbm %s921_s0, 128 }
  0x17   :  { %p668_p8 = scmp.ne.s32.totalorder %s921_s0, %s667_s21  ;;  %p671_p9 = scmp.lt.u32.totalorder %s667_s21, %s921_s0 }
  0x19   :  { %p673_p10 = pnand %p671_p9, %p668_p8 }
  0x1b   :  { %676 = shalt.err (!%p673_p10)
}
  0x1c   :  { %s677_s1 = scalar_lea.vmem %s23_s16, 128  ;;  %p682_p12 = scmp.lt.s32.totalorder %s23_s16, %s23_s16 }
  0x1d   :  { %p678_p11 = scmp.ne.s32.totalorder %s23_s16, %s677_s1  ;;  %p683_p13 = scmp.lt.s32.totalorder %s677_s1, %s677_s1 }
  0x1f   :  { %p684_p0 = por %p683_p13, %p682_p12 }
  0x21   :  { %p685_p1 = pnand %p684_p0, %p678_p11 }
  0x23   :  { %688 = shalt.err (!%p685_p1)
}
  0x24   :  { %25 = dma.hbm_to_vmem [thread:$0]  %s921_s0, 128, %s23_s16, [#allocation3]  }
  0x25   :  { %s689_s30 = scalar_lea.hbm %s924_s3, 2048 }
  0x26   :  { %p690_p2 = scmp.ne.s32.totalorder %s924_s3, %s689_s30  ;;  %p693_p3 = scmp.lt.u32.totalorder %s689_s30, %s924_s3 }
  0x28   :  { %p695_p4 = pnand %p693_p3, %p690_p2 }
  0x2a   :  { %698 = shalt.err (!%p695_p4)
}
  0x2b   :  { %s699_s14 = scalar_lea.vmem %s46_s18, 2048  ;;  %p704_p6 = scmp.lt.s32.totalorder %s46_s18, %s46_s18 }
  0x2c   :  { %p700_p5 = scmp.ne.s32.totalorder %s46_s18, %s699_s14  ;;  %p705_p7 = scmp.lt.s32.totalorder %s699_s14, %s699_s14 }
  0x2e   :  { %p706_p8 = por %p705_p7, %p704_p6 }
  0x30   :  { %p707_p9 = pnand %p706_p8, %p700_p5 }
  0x32   :  { %710 = shalt.err (!%p707_p9)
}
  0x33   :  { %51 = dma.hbm_to_vmem [thread:$0]  %s924_s3, 2048, %s46_s18, [#allocation6], %s764_s11, %s764_s11, %s765_s12  }
  0x34   :  { %s768_s16 = smov [#allocation8]   ;;  %s711_s21 = scalar_lea.hbm %s926_s5, 2048 }
  0x35   :  { %s59_s17 = sshll.u32 %s768_s16, 4  ;;  %p712_p10 = scmp.ne.s32.totalorder %s926_s5, %s711_s21  ;;  %s60_s17 = int_to_ptr.vmem [resolvable:$true] %s59_s17 }
  0x36   :  { %p715_p11 = scmp.lt.u32.totalorder %s711_s21, %s926_s5 }
  0x38   :  { %p717_p12 = pnand %p715_p11, %p712_p10 }
  0x3a   :  { %720 = shalt.err (!%p717_p12)
}
  0x3b   :  { %s721_s1 = scalar_lea.vmem %s60_s17, 2048  ;;  %p726_p0 = scmp.lt.s32.totalorder %s60_s17, %s60_s17 }
  0x3c   :  { %p722_p13 = scmp.ne.s32.totalorder %s60_s17, %s721_s1  ;;  %p727_p1 = scmp.lt.s32.totalorder %s721_s1, %s721_s1 }
  0x3e   :  { %p728_p2 = por %p727_p1, %p726_p0 }
  0x40   :  { %p729_p3 = pnand %p728_p2, %p722_p13 }
  0x42   :  { %732 = shalt.err (!%p729_p3)
}
  0x43   :  { %65 = dma.hbm_to_vmem [thread:$0]  %s926_s5, 2048, %s60_s17, [#allocation9], %s764_s11, %s764_s11, %s765_s12  }
  0x44   :  { %755 = dma.done.wait [#allocation3], 128  }
  0x45   :  { %756 = vsyncadd [#allocation3], 4294967168 }
  0x46   :  { %757 = dma.done.wait [#allocation6], 4096  }
  0x47   :  { %758 = vsyncadd [#allocation6], 4294963200 }
  0x48   :  { %759 = dma.done.wait [#allocation9], 2048  }
  0x49   :  { %760 = vsyncadd [#allocation9], 4294965248  ;;  %v769_v0 = vmov 0.0|0.0   ;;  %vm770_vm0 = vmmov 0   ;;  %v771_v1 = vmov 0.0   ;;  %v81_v2 = vld [vmem:[#allocation5] sm:$0xff] }
  0x4a   :  { %559 = vmatprep.subr.bf16.mxu0 %v769_v0  ;;  %486 = vmatprep.mubr.msk.f32.mxu0 %vm770_vm0, %v771_v1  ;;  %v82_v3 = vld [vmem:[#allocation5 + $0x8] sm:$0xff]  ;;  %v83_v4 = vld [vmem:[#allocation5 + $0x10] sm:$0xff]  ;;  %v84_v6 = vld [vmem:[#allocation5 + $0x18] sm:$0xff] }
  0x4b   :  { %583 = vmatprep.subr.bf16.mxu1 %v769_v0  ;;  %521 = vmatprep.mubr.msk.f32.mxu1 %vm770_vm0, %v771_v1  ;;  %v560_v5 = vpack.c.bf16 %v82_v3, %v81_v2  ;;  %v563_v7 = vpack.c.bf16 %v84_v6, %v83_v4  ;;  %v85_v8 = vld [vmem:[#allocation5 + $0x20] sm:$0xff]  ;;  %v86_v9 = vld [vmem:[#allocation5 + $0x28] sm:$0xff]  ;;  %v177_v12 = vld [vmem:[#allocation7 + $0x10] sm:$0xff] }
  0x4c   :  { %v175_v10 = vld [vmem:[#allocation7] sm:$0xff]  ;;  %v176_v11 = vld [vmem:[#allocation7 + $0x8] sm:$0xff]  ;;  %v178_v13 = vld [vmem:[#allocation7 + $0x18] sm:$0xff]  ;;  %v566_v14 = vpack.c.bf16 %v86_v9, %v85_v8 }
  0x4d   :  { %561 = vmatpush3.bf16.msra.mxu0 %v560_v5  ;;  %v584_v15 = vpack.c.bf16 %v176_v11, %v175_v10  ;;  %v87_v16 = vld [vmem:[#allocation5 + $0x30] sm:$0xff]  ;;  %v88_v17 = vld [vmem:[#allocation5 + $0x38] sm:$0xff]  ;;  %v587_v18 = vpack.c.bf16 %v178_v13, %v177_v12  ;;  %v179_v19 = vld [vmem:[#allocation7 + $0x20] sm:$0xff] }
  0x4e   :  { %562 = vmatprep.subr.bf16.mxu0 %v769_v0  ;;  %v180_v20 = vld [vmem:[#allocation7 + $0x28] sm:$0xff]  ;;  %v569_v21 = vpack.c.bf16 %v88_v17, %v87_v16  ;;  %v89_v22 = vld [vmem:[#allocation5 + $0x40] sm:$0xff]  ;;  %v181_v25 = vld [vmem:[#allocation7 + $0x30] sm:$0xff] }
  0x4f   :  { %585 = vmatpush3.bf16.msra.mxu1 %v584_v15  ;;  %v90_v23 = vld [vmem:[#allocation5 + $0x48] sm:$0xff]  ;;  %v590_v24 = vpack.c.bf16 %v180_v20, %v179_v19  ;;  %v182_v26 = vld [vmem:[#allocation7 + $0x38] sm:$0xff]  ;;  %v91_v28 = vld [vmem:[#allocation5 + $0x50] sm:$0xff] }
  0x50   :  { %586 = vmatprep.subr.bf16.mxu1 %v769_v0  ;;  %v572_v27 = vpack.c.bf16 %v90_v23, %v89_v22  ;;  %v92_v29 = vld [vmem:[#allocation5 + $0x58] sm:$0xff]  ;;  %v593_v30 = vpack.c.bf16 %v182_v26, %v181_v25  ;;  %v183_v31 = vld [vmem:[#allocation7 + $0x40] sm:$0xff]  ;;  %v184_v32 = vld [vmem:[#allocation7 + $0x48] sm:$0xff] }
  0x51   :  { %564 = vmatpush3.bf16.msra.mxu0 %v563_v7  ;;  %v575_v33 = vpack.c.bf16 %v92_v29, %v91_v28  ;;  %v93_v34 = vld [vmem:[#allocation5 + $0x60] sm:$0xff]  ;;  %v94_v35 = vld [vmem:[#allocation5 + $0x68] sm:$0xff]  ;;  %v596_v36 = vpack.c.bf16 %v184_v32, %v183_v31  ;;  %v185_v37 = vld [vmem:[#allocation7 + $0x50] sm:$0xff]  ;;  %v378_v32 = vlaneseq }
  0x52   :  { %565 = vmatprep.subr.bf16.mxu0 %v769_v0  ;;  %v186_v38 = vld [vmem:[#allocation7 + $0x58] sm:$0xff]  ;;  %v578_v39 = vpack.c.bf16 %v94_v35, %v93_v34  ;;  %v95_v40 = vld [vmem:[#allocation5 + $0x70] sm:$0xff]  ;;  %v187_v43 = vld [vmem:[#allocation7 + $0x60] sm:$0xff] }
  0x53   :  { %588 = vmatpush3.bf16.msra.mxu1 %v587_v18  ;;  %v96_v41 = vld [vmem:[#allocation5 + $0x78] sm:$0xff]  ;;  %v599_v42 = vpack.c.bf16 %v186_v38, %v185_v37  ;;  %v188_v44 = vld [vmem:[#allocation7 + $0x68] sm:$0xff]  ;;  %v189_v48 = vld [vmem:[#allocation7 + $0x70] sm:$0xff]  ;;  %v379_v37 = vand.u32 127, %v378_v32 }
  0x54   :  { %589 = vmatprep.subr.bf16.mxu1 %v769_v0  ;;  %v581_v45 = vpack.c.bf16 %v96_v41, %v95_v40  ;;  %v602_v46 = vpack.c.bf16 %v188_v44, %v187_v43  ;;  %v80_v47 = vld [vmem:[#allocation2] sm:$0xff]  ;;  %v269_v51 = vld [vmem:[#allocation8] sm:$0xff]  ;;  %v270_v52 = vld [vmem:[#allocation8 + $0x8] sm:$0xff] }
  0x55   :  { %567 = vmatpush3.bf16.msra.mxu0 %v566_v14  ;;  %v190_v49 = vld [vmem:[#allocation7 + $0x78] sm:$0xff]  ;;  %v271_v53 = vld [vmem:[#allocation8 + $0x10] sm:$0xff]  ;;  %v608_v54 = vpack.c.bf16 %v270_v52, %v269_v51  ;;  %v273_v57 = vld [vmem:[#allocation8 + $0x20] sm:$0xff]  ;;  %vm380_vm2 = vcmp.lt.s32.totalorder %v379_v37, 6 }
  0x56   :  { %568 = vmatprep.subr.bf16.mxu0 %v769_v0  ;;  %v605_v50 = vpack.c.bf16 %v190_v49, %v189_v48  ;;  %v272_v55 = vld [vmem:[#allocation8 + $0x18] sm:$0xff]  ;;  %v274_v58 = vld [vmem:[#allocation8 + $0x28] sm:$0xff]  ;;  %v275_v60 = vld [vmem:[#allocation8 + $0x30] sm:$0xff] }
  0x57   :  { %591 = vmatpush3.bf16.msra.mxu1 %v590_v24  ;;  %v611_v56 = vpack.c.bf16 %v272_v55, %v271_v53  ;;  %v614_v59 = vpack.c.bf16 %v274_v58, %v273_v57  ;;  %v276_v61 = vld [vmem:[#allocation8 + $0x38] sm:$0xff]  ;;  %v277_v63 = vld [vmem:[#allocation8 + $0x40] sm:$0xff]  ;;  %v279_v3 = vld [vmem:[#allocation8 + $0x50] sm:$0xff] }
  0x58   :  { %592 = vmatprep.subr.bf16.mxu1 %v769_v0  ;;  %v617_v62 = vpack.c.bf16 %v276_v61, %v275_v60  ;;  %v280_v4 = vld [vmem:[#allocation8 + $0x58] sm:$0xff]  ;;  %v281_v6 = vld [vmem:[#allocation8 + $0x60] sm:$0xff]  ;;  %v282_v7 = vld [vmem:[#allocation8 + $0x68] sm:$0xff] }
  0x59   :  { %570 = vmatpush3.bf16.msra.mxu0 %v569_v21  ;;  %v623_v5 = vpack.c.bf16 %v280_v4, %v279_v3  ;;  %v626_v8 = vpack.c.bf16 %v282_v7, %v281_v6  ;;  %v400_v9 = vld [vmem:[%s923_s2] ss:$0 sm:$0xff]  ;;  %v283_v14 = vld [vmem:[#allocation8 + $0x70] sm:$0xff] }
  0x5a   :  { %571 = vmatprep.subr.bf16.mxu0 %v769_v0  ;;  %v284_v15 = vld [vmem:[#allocation8 + $0x78] sm:$0xff] }
  0x5b   :  { %594 = vmatpush3.bf16.msra.mxu1 %v593_v30  ;;  %v629_v16 = vpack.c.bf16 %v284_v15, %v283_v14  ;;  %v401_v17 = vld [vmem:[%s925_s4] ss:$0 sm:$0xff]  ;;  %s772_s4 = smov [#allocation10]  }
  0x5c   :  { %595 = vmatprep.subr.bf16.mxu1 %v769_v0  ;;  %v402_v21 = vld [vmem:[%s927_s6] ss:$0 sm:$0xff]  ;;  %s389_s6 = sshll.u32 %s772_s4, 4  ;;  %s390_s6 = int_to_ptr.vmem [resolvable:$true] %s389_s6 }
  0x5d   :  { %573 = vmatpush3.bf16.msra.mxu0 %v572_v27  ;;  %s733_s28 = scalar_lea.vmem %s390_s6, 128  ;;  %p738_p5 = scmp.lt.s32.totalorder %s390_s6, %s390_s6 }
  0x5e   :  { %574 = vmatprep.subr.bf16.mxu0 %v769_v0  ;;  %p734_p4 = scmp.ne.s32.totalorder %s390_s6, %s733_s28  ;;  %p739_p6 = scmp.lt.s32.totalorder %s733_s28, %s733_s28 }
  0x5f   :  { %597 = vmatpush3.bf16.msra.mxu1 %v596_v36 }
  0x60   :  { %598 = vmatprep.subr.bf16.mxu1 %v769_v0  ;;  %p740_p7 = por %p739_p6, %p738_p5 }
  0x61   :  { %576 = vmatpush3.bf16.msra.mxu0 %v575_v33 }
  0x62   :  { %577 = vmatprep.subr.bf16.mxu0 %v769_v0  ;;  %p741_p8 = pnand %p740_p7, %p734_p4 }
  0x63   :  { %600 = vmatpush3.bf16.msra.mxu1 %v599_v42 }
  0x64   :  { %601 = vmatprep.subr.bf16.mxu1 %v769_v0 }
  0x65   :  { %579 = vmatpush3.bf16.msra.mxu0 %v578_v39 }
  0x66   :  { %580 = vmatprep.subr.bf16.mxu0 %v769_v0 }
  0x67   :  { %603 = vmatpush3.bf16.msra.mxu1 %v602_v46 }
  0x68   :  { %604 = vmatprep.subr.bf16.mxu1 %v769_v0 }
  0x69   :  { %582 = vmatpush3.bf16.msra.mxu0 %v581_v45 }
  0x6a   :  { %607 = vmatprep.subr.bf16.mxu0 %v769_v0 }
  0x6b   :  { %606 = vmatpush3.bf16.msra.mxu1 %v605_v50 }
  0x6c   :  { %487 = vmatmul.mubr.f32.vlgmr.msra.gmra.mrb[0].mxu0 %v80_v47 }
  0x6d   :  { %556 = vmatprep.mubr.msk.f32.mxu0 %vm770_vm0, %v771_v1  ;;  %609 = vmatpush3.bf16.msra.mxu0 %v608_v54  ;;  %v278_v1 = vld [vmem:[#allocation8 + $0x48] sm:$0xff] }
  0x6e   :  { %610 = vmatprep.subr.bf16.mxu0 %v769_v0  ;;  %v620_v2 = vpack.c.bf16 %v278_v1, %v277_v63 }
  0x71   :  { %612 = vmatpush3.bf16.msra.mxu0 %v611_v56 }
  0x72   :  { %613 = vmatprep.subr.bf16.mxu0 %v769_v0 }
  0x75   :  { %615 = vmatpush3.bf16.msra.mxu0 %v614_v59 }
  0x76   :  { %616 = vmatprep.subr.bf16.mxu0 %v769_v0 }
  0x79   :  { %618 = vmatpush3.bf16.msra.mxu0 %v617_v62 }
  0x7a   :  { %619 = vmatprep.subr.bf16.mxu0 %v769_v0 }
  0x7d   :  { %621 = vmatpush3.bf16.msra.mxu0 %v620_v2 }
  0x7e   :  { %622 = vmatprep.subr.bf16.mxu0 %v769_v0 }
  0x81   :  { %624 = vmatpush3.bf16.msra.mxu0 %v623_v5 }
  0x82   :  { %625 = vmatprep.subr.bf16.mxu0 %v769_v0 }
  0x85   :  { %627 = vmatpush3.bf16.msra.mxu0 %v626_v8 }
  0x86   :  { %628 = vmatprep.subr.bf16.mxu0 %v769_v0 }
  0x89   :  { %630 = vmatpush3.bf16.msra.mxu0 %v629_v16 }
 0x13f   :  { %v170_v10 = vpop.f32.mrb[0].mxu0 }
 0x140   :  { %v171_v11 = vadd.f32 %v400_v9, %v170_v10  ;;  %v488_v12 = vpop.f32.mrb[1].mxu0 }
 0x142   :  { %v174_v13 = vmax.f32 %v171_v11, 0.0 }
 0x144   :  { %522 = vmatmul.mubr.f32.vlgmr.msra.gmra.mrb[0].mxu1 %v174_v13 }
 0x217   :  { %v264_v18 = vpop.f32.mrb[0].mxu1 }
 0x218   :  { %v265_v19 = vadd.f32 %v401_v17, %v264_v18  ;;  %v523_v0 = vpop.f32.mrb[1].mxu1 }
 0x21a   :  { %v268_v20 = vmax.f32 %v265_v19, 0.0 }
 0x21c   :  { %557 = vmatmul.mubr.f32.vlgmr.msra.gmra.mrb[2].mxu0 %v268_v20 }
 0x2ef   :  { %v358_v22 = vpop.f32.mrb[2].mxu0 }
 0x2f0   :  { %v359_v23 = vadd.f32 %v402_v21, %v358_v22  ;;  %v558_v24 = vpop.f32.mrb[3].mxu0 }
 0x2f2   :  { %v363_v25 = vand.u32 2147483647, %v359_v23  ;;  %v362_v38 = vmax.f32 %v359_v23, 0.0 }
 0x2f4   :  { %v364_v26 = vsub.f32 0.0, %v363_v25 }
 0x2f6   :  { %v365_v27 = vmul.f32 1.442695, %v364_v26 }
 0x2f8   :  { %641 = vpow2.f32 %v365_v27 }
 0x302   :  { %v642_v28 = vpop.eup %641 }
 0x303   :  { %v367_v29 = vadd.f32 1.0, %v642_v28  ;;  %v370_v30 = vmul.f32 -0.5, %v642_v28  ;;  %v373_v33 = vand.u32 2147483647, %v642_v28 }
 0x305   :  { %643 = vlog2.f32 %v367_v29  ;;  %v371_v31 = vadd.f32 1.0, %v370_v30  ;;  %vm374_vm1 = vcmp.lt.f32.partialorder %v373_v33, 0.0004427343 }
 0x307   :  { %v372_v36 = vmul.f32 %v642_v28, %v371_v31 }
 0x30f   :  { %v644_v34 = vpop.eup %643 }
 0x310   :  { %v369_v35 = vmul.f32 0.6931472, %v644_v34 }
 0x312   :  { %v375_v39 = vsel %vm374_vm1, %v372_v36, %v369_v35 }
 0x313   :  { %v376_v40 = vadd.f32 %v375_v39, %v362_v38 }
 0x315   :  { %v377_v41 = vadd.f32 1e-05, %v376_v40 }
 0x317   :  { %v381_v42 = vsel %vm380_vm2, %v359_v23, %v377_v41 }
 0x318   :  { %382 = vst [vmem:[#allocation10] sm:$0xff] %v381_v42 }
 0x319   :  { %744 = shalt.err (!%p741_p8)
}
 0x31a   :  { %s745_s8 = scalar_lea.hbm %s928_s7, 128 }
 0x31b   :  { %p746_p9 = scmp.ne.s32.totalorder %s928_s7, %s745_s8  ;;  %p749_p10 = scmp.lt.u32.totalorder %s745_s8, %s928_s7 }
 0x31d   :  { %p751_p11 = pnand %p749_p10, %p746_p9 }
 0x31f   :  { %754 = shalt.err (!%p751_p11)
}
 0x320   :  { %392 = dma.vmem_to_hbm [thread:$0]  %s390_s6, 128, %s928_s7, [#allocation4]  }
 0x321   :  { %761 = dma.done.wait [#allocation4], 128  }
 0x322   :  { %762 = vsyncadd [#allocation4], 4294967168 }
 0x323   :  { %396 = vsyncpa [#allocation3], 1 }
 0x324   :  { %397 = vsyncpa [#allocation6], 1 }
 0x325   :  { %398 = vsyncpa [#allocation9], 1 }
 0x326   :  { %399 = vsyncpa [#allocation4], 1 }

</bundles_post_ra>
